<compile_context>
chip_gen: v7x
topology: tpu7x:2x2x1
jax: 0.10.0
libtpu: 0.0.40
codegen_flags: <defaults>
</compile_context>

<pallas_src>
import functools

import jax
import jax.numpy as jnp
from jax import lax
from jax.experimental import pallas as pl
from jax.experimental.pallas import tpu as pltpu


def _round_up(x: int, m: int) -> int:
    return ((x + m - 1) // m) * m


def _skew_symmetric_kernel(p_ref, out_ref, *, d: int):
    """p_ref:   VMEM f32[1, n_pad]   zero-padded flat lower-tri parameters.
    out_ref: VMEM f32[r_pad, c_pad], r_pad = round_up(d, 8) (sublane pad),
                                     c_pad = round_up(d, 128) (lane pad)."""
    r_pad, c_pad = out_ref.shape
    col = lax.broadcasted_iota(jnp.int32, (1, c_pad), 1)

    # Lower triangle, built entirely in vregs (no scratch, no zero-fill pass):
    #   L[i, j] = p[i*(i+1)//2 + j]  for j <= i, else 0.
    # Row i of L is a *contiguous* slice of p -> one static lane-slice vector
    # load + one select per row; rows are concatenated into one value so the
    # output is written with a single unmasked full-tile store.
    rows = []
    for i in range(r_pad):
        if i < d:
            off = i * (i + 1) // 2
            row = p_ref[:, off:off + c_pad]                  # (1, c_pad)
            rows.append(jnp.where(col <= i, row, 0.0))
        else:
            rows.append(jnp.zeros((1, c_pad), jnp.float32))  # sublane padding
    low = jnp.concatenate(rows, axis=0)                      # (r_pad, c_pad)

    # Mirror: A = L - L^T.  Zero-pad L's rows to a (c_pad, c_pad) square so the
    # XLU transpose is fully (8, 128)-tile aligned, then keep the top r_pad
    # rows.  Everything outside [:d, :d] comes out exactly 0.
    if r_pad == c_pad:
        low_sq = low
    else:
        low_sq = jnp.concatenate(
            [low, jnp.zeros((c_pad - r_pad, c_pad), jnp.float32)], axis=0)
    upper = low_sq.T[:r_pad, :]                              # (r_pad, c_pad)

    out_ref[...] = low - upper                               # one full-tile store


def skew_symmetric_forward(explicit_p: jax.Array, dimension: int) -> jax.Array:
    """Forward pass of SkewSymmetricParameter (constant_parameter=True).

    explicit_p: (N, 1) float32, N = dimension*(dimension+1)//2 (nn.Parameter shape)
    returns:    (dimension, dimension) float32 skew-symmetric matrix.
    """
    d = int(dimension)
    n = d * (d + 1) // 2
    assert explicit_p.shape == (n, 1), explicit_p.shape
    if d > 128:
        # TODO(synk): 2-D tiled grid for d > 128 (see header TODO).
        raise NotImplementedError("SkewSymmetricParameter kernel supports d <= 128")

    r_pad = _round_up(max(d, 1), 8)      # sublane pad only (f32 tile is (8, 128))
    c_pad = _round_up(max(d, 1), 128)    # lane-dense output block
    # Every static row slice p[tri(i) : tri(i)+c_pad] must stay in bounds.
    n_pad = _round_up((d - 1) * d // 2 + c_pad, 128)

    # Glue: flatten the (N, 1) parameter into a lane-dense, zero-padded row.
    p_flat = explicit_p.reshape(n).astype(jnp.float32)
    p_row = jnp.zeros((1, n_pad), jnp.float32).at[0, :n].set(p_flat)

    out_pad = pl.pallas_call(
        functools.partial(_skew_symmetric_kernel, d=d),
        out_shape=jax.ShapeDtypeStruct((r_pad, c_pad), jnp.float32),
        in_specs=[pl.BlockSpec(memory_space=pltpu.MemorySpace.VMEM)],
        out_specs=pl.BlockSpec(memory_space=pltpu.MemorySpace.VMEM),
    )(p_row)

    # out_pad is the exact zero-padded skew-symmetric matrix; slice to (d, d).
    return out_pad[:d, :d]


if __name__ == "__main__":
    d = 8
    # `factorial(d)` in the reference is actually the triangular number d*(d+1)//2
    n = d * (d + 1) // 2

    key = jax.random.PRNGKey(0)
    # matches nn.Parameter(th.rand((n, 1))) -> uniform [0, 1), deterministic here
    explicit_p = jax.random.uniform(key, (n, 1), dtype=jnp.float32)

    out = jax.block_until_ready(skew_symmetric_forward(explicit_p, d))

    # Pure-JAX reference: scatter into the lower triangle (torch.tril_indices
    # row-major order), then L - L^T.
    tril = jnp.asarray(
        [(i, j) for i in range(d) for j in range(i + 1)], dtype=jnp.int32
    )
    L = jnp.zeros((d, d), jnp.float32).at[tril[:, 0], tril[:, 1]].set(explicit_p[:, 0])
    ref = L - L.T

    assert out.shape == (d, d) and out.dtype == jnp.float32
    assert jnp.allclose(out, ref, atol=1e-6)
    assert jnp.allclose(out, -out.T, atol=1e-6)  # skew-symmetry
    print("KERNEL_OK")
</pallas_src>

<mosaic_0001>
module attributes {stable_mosaic.version = 11 : i64} {
  func.func @_skew_symmetric_kernel(%arg0: memref<1x256xf32, #tpu.memory_space<vmem>>, %arg1: memref<8x128xf32, #tpu.memory_space<vmem>>) attributes {dimension_semantics = [], scalar_prefetch = 0 : i64, scratch_operands = 0 : i64, tpu.core_type = #tpu.core_type<tc>} {
    %0 = tpu.iota {dimensions = array<i32: 1>} : vector<1x128xi32>
    %c0 = arith.constant 0 : index
    %c0_0 = arith.constant 0 : index
    %1 = vector.load %arg0[%c0, %c0_0] : memref<1x256xf32, #tpu.memory_space<vmem>>, vector<1x128xf32>
    %c0_i32 = arith.constant 0 : i32
    %2 = vector.broadcast %c0_i32 : i32 to vector<1x128xi32>
    %3 = arith.cmpi sle, %0, %2 : vector<1x128xi32>
    %cst = arith.constant 0.000000e+00 : f32
    %4 = vector.broadcast %cst : f32 to vector<1x128xf32>
    %5 = arith.select %3, %1, %4 : vector<1x128xi1>, vector<1x128xf32>
    %c0_1 = arith.constant 0 : index
    %c1 = arith.constant 1 : index
    %6 = vector.load %arg0[%c0_1, %c1] : memref<1x256xf32, #tpu.memory_space<vmem>>, vector<1x128xf32>
    %c1_i32 = arith.constant 1 : i32
    %7 = vector.broadcast %c1_i32 : i32 to vector<1x128xi32>
    %8 = arith.cmpi sle, %0, %7 : vector<1x128xi32>
    %cst_2 = arith.constant 0.000000e+00 : f32
    %9 = vector.broadcast %cst_2 : f32 to vector<1x128xf32>
    %10 = arith.select %8, %6, %9 : vector<1x128xi1>, vector<1x128xf32>
    %c0_3 = arith.constant 0 : index
    %c3 = arith.constant 3 : index
    %11 = vector.load %arg0[%c0_3, %c3] : memref<1x256xf32, #tpu.memory_space<vmem>>, vector<1x128xf32>
    %c2_i32 = arith.constant 2 : i32
    %12 = vector.broadcast %c2_i32 : i32 to vector<1x128xi32>
    %13 = arith.cmpi sle, %0, %12 : vector<1x128xi32>
    %cst_4 = arith.constant 0.000000e+00 : f32
    %14 = vector.broadcast %cst_4 : f32 to vector<1x128xf32>
    %15 = arith.select %13, %11, %14 : vector<1x128xi1>, vector<1x128xf32>
    %c0_5 = arith.constant 0 : index
    %c6 = arith.constant 6 : index
    %16 = vector.load %arg0[%c0_5, %c6] : memref<1x256xf32, #tpu.memory_space<vmem>>, vector<1x128xf32>
    %c3_i32 = arith.constant 3 : i32
    %17 = vector.broadcast %c3_i32 : i32 to vector<1x128xi32>
    %18 = arith.cmpi sle, %0, %17 : vector<1x128xi32>
    %cst_6 = arith.constant 0.000000e+00 : f32
    %19 = vector.broadcast %cst_6 : f32 to vector<1x128xf32>
    %20 = arith.select %18, %16, %19 : vector<1x128xi1>, vector<1x128xf32>
    %c0_7 = arith.constant 0 : index
    %c10 = arith.constant 10 : index
    %21 = vector.load %arg0[%c0_7, %c10] : memref<1x256xf32, #tpu.memory_space<vmem>>, vector<1x128xf32>
    %c4_i32 = arith.constant 4 : i32
    %22 = vector.broadcast %c4_i32 : i32 to vector<1x128xi32>
    %23 = arith.cmpi sle, %0, %22 : vector<1x128xi32>
    %cst_8 = arith.constant 0.000000e+00 : f32
    %24 = vector.broadcast %cst_8 : f32 to vector<1x128xf32>
    %25 = arith.select %23, %21, %24 : vector<1x128xi1>, vector<1x128xf32>
    %c0_9 = arith.constant 0 : index
    %c15 = arith.constant 15 : index
    %26 = vector.load %arg0[%c0_9, %c15] : memref<1x256xf32, #tpu.memory_space<vmem>>, vector<1x128xf32>
    %c5_i32 = arith.constant 5 : i32
    %27 = vector.broadcast %c5_i32 : i32 to vector<1x128xi32>
    %28 = arith.cmpi sle, %0, %27 : vector<1x128xi32>
    %cst_10 = arith.constant 0.000000e+00 : f32
    %29 = vector.broadcast %cst_10 : f32 to vector<1x128xf32>
    %30 = arith.select %28, %26, %29 : vector<1x128xi1>, vector<1x128xf32>
    %c0_11 = arith.constant 0 : index
    %c21 = arith.constant 21 : index
    %31 = vector.load %arg0[%c0_11, %c21] : memref<1x256xf32, #tpu.memory_space<vmem>>, vector<1x128xf32>
    %c6_i32 = arith.constant 6 : i32
    %32 = vector.broadcast %c6_i32 : i32 to vector<1x128xi32>
    %33 = arith.cmpi sle, %0, %32 : vector<1x128xi32>
    %cst_12 = arith.constant 0.000000e+00 : f32
    %34 = vector.broadcast %cst_12 : f32 to vector<1x128xf32>
    %35 = arith.select %33, %31, %34 : vector<1x128xi1>, vector<1x128xf32>
    %c0_13 = arith.constant 0 : index
    %c28 = arith.constant 28 : index
    %36 = vector.load %arg0[%c0_13, %c28] : memref<1x256xf32, #tpu.memory_space<vmem>>, vector<1x128xf32>
    %c7_i32 = arith.constant 7 : i32
    %37 = vector.broadcast %c7_i32 : i32 to vector<1x128xi32>
    %38 = arith.cmpi sle, %0, %37 : vector<1x128xi32>
    %cst_14 = arith.constant 0.000000e+00 : f32
    %39 = vector.broadcast %cst_14 : f32 to vector<1x128xf32>
    %40 = arith.select %38, %36, %39 : vector<1x128xi1>, vector<1x128xf32>
    %41 = tpu.concatenate %5, %10, %15, %20, %25, %30, %35, %40 in 0 : vector<1x128xf32>, vector<1x128xf32>, vector<1x128xf32>, vector<1x128xf32>, vector<1x128xf32>, vector<1x128xf32>, vector<1x128xf32>, vector<1x128xf32> -> vector<8x128xf32>
    %cst_15 = arith.constant 0.000000e+00 : f32
    %42 = vector.broadcast %cst_15 : f32 to vector<120x128xf32>
    %43 = tpu.concatenate %41, %42 in 0 : vector<8x128xf32>, vector<120x128xf32> -> vector<128x128xf32>
    %44 = tpu.transpose %43, [1, 0] : vector<128x128xf32> -> vector<128x128xf32>
    %45 = vector.extract_strided_slice %44 {offsets = [0, 0], sizes = [8, 128], strides = [1, 1]} : vector<128x128xf32> to vector<8x128xf32>
    %46 = arith.subf %41, %45 : vector<8x128xf32>
    %c0_16 = arith.constant 0 : index
    %c0_17 = arith.constant 0 : index
    %47 = vector.load %arg1[%c0_16, %c0_17] : memref<8x128xf32, #tpu.memory_space<vmem>>, vector<8x128xf32>
    tpu.vector_store %arg1[%c0_16, %c0_17], %46 {strides = array<i32>} : memref<8x128xf32, #tpu.memory_space<vmem>>, vector<8x128xf32>,
    return
  }
}

</mosaic_0001>

<bundles_post_ra>
// kernel: tpu_custom_call.1
= control target key start
LH: loop header
LB: loop body
LE: loop exit
PB: predicated region body
PF: predicated region fallthrough
CT: control target
= control target key end

     0   :  { %6 = vsyncpa [#allocation3], 0  ;;  %s284_s0 = inlined_call_operand.hbm [shape: f32[1,256], index: 0, kind: input, shape index: {}]   ;;  %s285_s1 = inlined_call_operand.hbm [shape: f32[8,128], index: 1, kind: output, shape index: {}]  }
   0x1   :  { %7 = vsyncpa [#allocation4], 0  ;;  %s241_s6 = smov [#allocation2]   ;;  %s193_s10 = scalar_lea.hbm %s284_s0, 32 }
   0x2   :  { %s14_s7 = sshll.u32 %s241_s6, 4  ;;  %p194_p0 = scmp.ne.s32.totalorder %s284_s0, %s193_s10  ;;  %s15_s7 = int_to_ptr.vmem [resolvable:$true] %s14_s7 }
   0x3   :  { %p197_p1 = scmp.lt.u32.totalorder %s193_s10, %s284_s0 }
   0x5   :  { %p199_p2 = pnand %p197_p1, %p194_p0 }
   0x7   :  { %202 = shalt.err (!%p199_p2)
}
   0x8   :  { %s203_s15 = scalar_lea.vmem %s15_s7, 32  ;;  %p208_p4 = scmp.lt.s32.totalorder %s15_s7, %s15_s7 }
   0x9   :  { %p204_p3 = scmp.ne.s32.totalorder %s15_s7, %s203_s15  ;;  %p209_p5 = scmp.lt.s32.totalorder %s203_s15, %s203_s15 }
   0xb   :  { %p210_p6 = por %p209_p5, %p208_p4 }
   0xd   :  { %p211_p7 = pnand %p210_p6, %p204_p3 }
   0xf   :  { %214 = shalt.err (!%p211_p7)
}
  0x10   :  { %17 = dma.hbm_to_vmem [thread:$0]  %s284_s0, 32, %s15_s7, [#allocation3]  }
  0x11   :  { %237 = dma.done.wait [#allocation3], 32  }
  0x12   :  { %238 = vsyncadd [#allocation3], 4294967264  ;;  %v21_v0 = vlaneseq  ;;  %v26_v4 = vld [vmem:[#allocation2] sm:$0x3]  ;;  %s242_s18 = smov 125   ;;  %s243_s19 = smov 127  }
  0x13   :  { %s244_s20 = smov 122   ;;  %s245_s21 = smov 118   ;;  %vm41_vm0 = vcmask 1039360   ;;  %vm50_vm1 = vcmask 1022976   ;;  %vm59_vm3 = vcmask 998400   ;;  %vm68_vm4 = vcmask 965632  }
  0x14   :  { %v30_v1 = vshrl.u32 %v21_v0, 7  ;;  %s246_s0 = smov 113   ;;  %s247_s22 = smov 107   ;;  %v22_v11 = vand.u32 127, %v21_v0  ;;  %vm77_vm6 = vcmask 924672   ;;  %vm120_vm11 = vcmask 1040384  }
  0x15   :  { %s248_s23 = smov 100   ;;  %v23_v19 = vld [vmem:[#allocation2] sm:$0x1]  ;;  %vm86_vm12 = vcmask 875520   ;;  %vm122_vm14 = vcmask 1041408   ;;  %vm124_vm15 = vcmask 1042432  }
  0x16   :  { %v31_v2 = vsub.s32 0, %v30_v1  ;;  %v35_v3 = vsub.s32 1, %v30_v1  ;;  %vm27_vm2 = vcmp.le.s32.totalorder %v22_v11, 1  ;;  %vm45_vm5 = vcmp.le.s32.totalorder %v22_v11, 2  ;;  %s249_s24 = smov [#allocation5]  }
  0x17   :  { %vm24_vm7 = vcmp.le.s32.totalorder %v22_v11, 0  ;;  %vm54_vm8 = vcmp.le.s32.totalorder %v22_v11, 3  ;;  %vm63_vm9 = vcmp.le.s32.totalorder %v22_v11, 4  ;;  %vm72_vm10 = vcmp.le.s32.totalorder %v22_v11, 5  ;;  %s174_s25 = sshll.u32 %s249_s24, 4  ;;  %s175_s25 = int_to_ptr.vmem [resolvable:$true] %s174_s25 }
  0x18   :  { %v32_v5 = vrot.slane %v26_v4, %v31_v2  ;;  %v36_v6 = vrot.slane %v26_v4, %v35_v3  ;;  %v25_v27 = vsel %vm24_vm7, %v23_v19, 0.0  ;;  %vm81_vm13 = vcmp.le.s32.totalorder %v22_v11, 6  ;;  %s215_s26 = scalar_lea.vmem %s175_s25, 128  ;;  %p220_p9 = scmp.lt.s32.totalorder %s175_s25, %s175_s25 }
  0x19   :  { %p216_p8 = scmp.ne.s32.totalorder %s175_s25, %s215_s26  ;;  %p221_p10 = scmp.lt.s32.totalorder %s215_s26, %s215_s26 }
  0x1a   :  { %46 = vrot.lane.b32.xlu1 %v32_v5, %s242_s18  ;;  %37 = vrot.lane.b32.xlu0 %v32_v5, %s243_s19 }
  0x1b   :  { %p222_p11 = por %p221_p10, %p220_p9 }
  0x1d   :  { %p223_p12 = pnand %p222_p11, %p216_p8 }
  0x1e   :  { %48 = vrot.lane.b32.xlu1 %v36_v6, %s242_s18  ;;  %39 = vrot.lane.b32.xlu0 %v36_v6, %s243_s19 }
  0x22   :  { %57 = vrot.lane.b32.xlu1 %v36_v6, %s244_s20  ;;  %55 = vrot.lane.b32.xlu0 %v32_v5, %s244_s20 }
  0x26   :  { %66 = vrot.lane.b32.xlu1 %v36_v6, %s245_s21  ;;  %64 = vrot.lane.b32.xlu0 %v32_v5, %s245_s21 }
  0x2a   :  { %75 = vrot.lane.b32.xlu1 %v36_v6, %s246_s0  ;;  %73 = vrot.lane.b32.xlu0 %v32_v5, %s246_s0 }
  0x2e   :  { %84 = vrot.lane.b32.xlu1 %v36_v6, %s247_s22  ;;  %82 = vrot.lane.b32.xlu0 %v32_v5, %s247_s22 }
  0x32   :  { %93 = vrot.lane.b32.xlu1 %v36_v6, %s248_s23  ;;  %91 = vrot.lane.b32.xlu0 %v32_v5, %s248_s23 }
  0x8c   :  { %v47_v7 = vpop.permute.xlu1 %46  ;;  %v38_v8 = vpop.permute.xlu0 %37 }
  0x90   :  { %v49_v9 = vpop.permute.xlu1 %48  ;;  %v40_v10 = vpop.permute.xlu0 %39 }
  0x91   :  { %v42_v14 = vsel %vm41_vm0, %v38_v8, %v40_v10  ;;  %v51_v17 = vsel %vm50_vm1, %v47_v7, %v49_v9  ;;  %vm95_vm0 = vcmask 818176   ;;  %vm90_vm1 = vcmp.le.s32.totalorder %v22_v11, 7 }
  0x92   :  { %v44_v18 = vsel %vm27_vm2, %v42_v14, 0.0  ;;  %v53_v24 = vsel %vm45_vm5, %v51_v17, 0.0  ;;  %vm126_vm2 = vcmask 1043456   ;;  %vm132_vm5 = vcmask 1046528  }
  0x93   :  { %v100_v25 = vrot.slane %v44_v18, 7  ;;  %v103_v30 = vrot.slane %v53_v24, 6 }
  0x94   :  { %v58_v12 = vpop.permute.xlu1 %57  ;;  %v56_v13 = vpop.permute.xlu0 %55 }
  0x95   :  { %v60_v20 = vsel %vm59_vm3, %v56_v13, %v58_v12  ;;  %v121_v34 = vsel %vm120_vm11, %v25_v27, %v100_v25  ;;  %vm128_vm3 = vcmask 1044480  }
  0x96   :  { %v62_v28 = vsel %vm54_vm8, %v60_v20, 0.0  ;;  %v123_v40 = vsel %vm122_vm14, %v121_v34, %v103_v30 }
  0x97   :  { %v106_v35 = vrot.slane %v62_v28, 5 }
  0x98   :  { %v67_v15 = vpop.permute.xlu1 %66  ;;  %v65_v16 = vpop.permute.xlu0 %64 }
  0x99   :  { %v69_v21 = vsel %vm68_vm4, %v65_v16, %v67_v15  ;;  %v125_v44 = vsel %vm124_vm15, %v123_v40, %v106_v35  ;;  %vm130_vm4 = vcmask 1045504  }
  0x9a   :  { %v71_v29 = vsel %vm63_vm9, %v69_v21, 0.0 }
  0x9b   :  { %v109_v37 = vrot.slane %v71_v29, 4 }
  0x9c   :  { %v76_v22 = vpop.permute.xlu1 %75  ;;  %v74_v23 = vpop.permute.xlu0 %73 }
  0x9d   :  { %v78_v26 = vsel %vm77_vm6, %v74_v23, %v76_v22  ;;  %v127_v47 = vsel %vm126_vm2, %v125_v44, %v109_v37 }
  0x9e   :  { %v80_v31 = vsel %vm72_vm10, %v78_v26, 0.0 }
  0x9f   :  { %v112_v39 = vrot.slane %v80_v31, 3 }
  0xa0   :  { %v85_v32 = vpop.permute.xlu1 %84  ;;  %v83_v33 = vpop.permute.xlu0 %82 }
  0xa1   :  { %v87_v36 = vsel %vm86_vm12, %v83_v33, %v85_v32  ;;  %v129_v49 = vsel %vm128_vm3, %v127_v47, %v112_v39 }
  0xa2   :  { %v89_v38 = vsel %vm81_vm13, %v87_v36, 0.0 }
  0xa3   :  { %v115_v41 = vrot.slane %v89_v38, 2 }
  0xa4   :  { %v94_v42 = vpop.permute.xlu1 %93  ;;  %v92_v43 = vpop.permute.xlu0 %91 }
  0xa5   :  { %v96_v45 = vsel %vm95_vm0, %v92_v43, %v94_v42  ;;  %v131_v50 = vsel %vm130_vm4, %v129_v49, %v115_v41 }
  0xa6   :  { %v98_v46 = vsel %vm90_vm1, %v96_v45, 0.0 }
  0xa7   :  { %v118_v48 = vrot.slane %v98_v46, 1 }
  0xa9   :  { %v133_v51 = vsel %vm132_vm5, %v131_v50, %v118_v48 }
  0xaa   :  { %134 = vxpose.xlu0.b32.start.end [1/1] (short) (narrow) %v133_v51, 8 }
 0x12a   :  { %v150_v52 = vpop.trf.xlu0 }
 0x12b   :  { %v166_v53 = vsub.f32 %v133_v51, %v150_v52 }
 0x12d   :  { %167 = vst [vmem:[#allocation5] sm:$0xff] %v166_v53 }
 0x12e   :  { %226 = shalt.err (!%p223_p12)
}
 0x12f   :  { %s227_s29 = scalar_lea.hbm %s285_s1, 128 }
 0x130   :  { %p228_p13 = scmp.ne.s32.totalorder %s285_s1, %s227_s29  ;;  %p231_p0 = scmp.lt.u32.totalorder %s227_s29, %s285_s1 }
 0x132   :  { %p233_p1 = pnand %p231_p0, %p228_p13 }
 0x134   :  { %236 = shalt.err (!%p233_p1)
}
 0x135   :  { %177 = dma.vmem_to_hbm [thread:$0]  %s175_s25, 128, %s285_s1, [#allocation4]  }
 0x136   :  { %239 = dma.done.wait [#allocation4], 128  }
 0x137   :  { %240 = vsyncadd [#allocation4], 4294967168 }
 0x138   :  { %181 = vsyncpa [#allocation3], 1 }
 0x139   :  { %182 = vsyncpa [#allocation4], 1 }

</bundles_post_ra>
